<compile_context>
chip_gen: v5e
topology: v5e:2x2
jax: 0.10.0
libtpu: 0.0.40
codegen_flags: <defaults>
</compile_context>

<pallas_src>
import functools

import jax
import jax.numpy as jnp
from jax import lax
from jax.experimental import pallas as pl
from jax.experimental.pallas import tpu as pltpu


def _round_up(x, m):
    return (x + m - 1) // m * m


def _disc_kernel(x_ref, att_ref, w1x_ref, w1a_ref, b1_ref, w2_ref, b2_ref, o_ref):
    # x_ref  : (TB, f_dim)      f32   activation tile (batch-major, as stored in HBM)
    # att_ref: (TB, atts_dim)   f32
    # w1x_ref: (h_dim, f_dim)   bf16  first Linear weight, x-columns (torch [out, in])
    # w1a_ref: (h_dim, atts_dim)bf16  first Linear weight, att-columns
    # b1_ref : (h_dim, 1)       f32
    # w2_ref : (h_dim, 1)       f32   second Linear weight as a column
    # b2_ref : (1, 1)           f32
    # o_ref  : (1, TB)          f32   lane-dense logits tile

    # In-kernel bf16 cast (fused with the HBM->VMEM pipeline; no extra XLA op).
    x = x_ref[...].astype(jnp.bfloat16)
    a = att_ref[...].astype(jnp.bfloat16)

    # "Virtual concat": cat([x, att], 1) @ W1^T  ==  W1x @ x^T + W1a @ att^T,
    # each a K=16 MXU matmul contracting on the feature dim, fp32 accumulation.
    dn = (((1,), (1,)), ((), ()))  # contract lhs dim 1 with rhs dim 1 -> (h_dim, TB)
    hidden = lax.dot_general(w1x_ref[...], x, dn, preferred_element_type=jnp.float32)
    hidden = hidden + lax.dot_general(
        w1a_ref[...], a, dn, preferred_element_type=jnp.float32)

    # Bias + ReLU in fp32 on the VPU.
    hidden = jnp.maximum(hidden + b1_ref[...], 0.0)

    # Second Linear has a single output unit: VPU multiply + sublane (XLU) reduce
    # instead of wasting an MXU push/drain on an N=1 matmul.
    logits = jnp.sum(hidden * w2_ref[...], axis=0, keepdims=True) + b2_ref[...]  # (1, TB)
    o_ref[...] = logits.astype(o_ref.dtype)


@functools.partial(jax.jit, static_argnames=("block_b",))
def discriminator_forward(x, att, params, block_b=16384):
    """x: [B, f_dim], att: [B, atts_dim] -> [B, 1] logits (matches torch forward)."""
    w1, b1, w2, b2 = params
    B, f_dim = x.shape
    atts_dim = att.shape[1]
    h_dim, in_dim = w1.shape

    # One-time, tiny weight prep (h_dim x in_dim = 32x32): split across the concat
    # boundary and cast to bf16 for the MXU path. Activations are NOT touched here.
    w1x = w1[:, :f_dim].astype(jnp.bfloat16)
    w1a = w1[:, f_dim:].astype(jnp.bfloat16)

    # Batch tile: multiple of 128 lanes, large enough to amortize per-step overhead,
    # capped so large B keeps >= 2 tiles (both v7x TensorCores busy). Small B gets a
    # single full-extent tile (exact blocks, no padding at all).
    tb = min(_round_up(block_b, 128), _round_up(pl.cdiv(B, 2), 128))
    tb = max(tb, 128)
    if B <= tb:
        tb = B
    num_tiles = pl.cdiv(B, tb)  # boundary tile (if any) is partial; OOB writes masked

    bytes_accessed = (
        x.size * x.dtype.itemsize + att.size * att.dtype.itemsize
        + (w1x.size + w1a.size) * 2
        + (b1.size + w2.size + b2.size) * 4
        + B * 4)
    flops = 2 * B * in_dim * h_dim + 2 * B * h_dim

    out = pl.pallas_call(
        _disc_kernel,
        out_shape=jax.ShapeDtypeStruct((1, B), jnp.float32),
        grid=(num_tiles,),
        in_specs=[
            # Pipelined (double-buffered) activation tiles.
            # If v5e profiling shows exposed DMA, add pipeline_mode=pl.Buffered(3) here.
            pl.BlockSpec((tb, f_dim), lambda i: (i, 0)),
            pl.BlockSpec((tb, atts_dim), lambda i: (i, 0)),
            # Weights / biases: constant index_map -> resident in VMEM across the grid.
            pl.BlockSpec((h_dim, f_dim), lambda i: (0, 0)),
            pl.BlockSpec((h_dim, atts_dim), lambda i: (0, 0)),
            pl.BlockSpec((h_dim, 1), lambda i: (0, 0)),
            pl.BlockSpec((h_dim, 1), lambda i: (0, 0)),
            pl.BlockSpec((1, 1), lambda i: (0, 0)),
        ],
        out_specs=pl.BlockSpec((1, tb), lambda i: (0, i)),  # lane-dense unmasked stores
        compiler_params=pltpu.CompilerParams(
            dimension_semantics=("parallel",),
            vmem_limit_bytes=32 * 1024 * 1024,
        ),
        cost_estimate=pl.CostEstimate(
            flops=flops, transcendentals=0, bytes_accessed=bytes_accessed),
    )(x, att, w1x, w1a, b1, w2, b2)

    # (1, B) -> (B, 1): pure reshape (same element order), no relayout.
    return out.reshape(B, 1)


def init_params(key, f_dim, atts_dim, h_dim):
    """Mirror weights_init: Linear weights ~ N(0, 0.02), biases = 0."""
    k1, k2 = jax.random.split(key)
    in_dim = f_dim + atts_dim
    # torch Linear weight layout is [out, in]; keep it (kernel splits it itself).
    w1 = jax.random.normal(k1, (h_dim, in_dim), dtype=jnp.float32) * 0.02
    b1 = jnp.zeros((h_dim, 1), dtype=jnp.float32)
    w2 = jax.random.normal(k2, (h_dim, 1), dtype=jnp.float32) * 0.02  # 2nd Linear, column
    b2 = jnp.zeros((1, 1), dtype=jnp.float32)
    return (w1, b1, w2, b2)


def _reference(x, att, params):
    """Plain-JAX reference (same math as the torch module) on the same bf16-rounded
    operands the kernel consumes (activations + w1 rounded to bf16, fp32 accumulate)."""
    w1, b1, w2, b2 = params
    h_in = jnp.concatenate([x, att], axis=1).astype(jnp.bfloat16).astype(jnp.float32)
    w1f = w1.astype(jnp.bfloat16).astype(jnp.float32)
    hid = jnp.maximum(
        jnp.matmul(h_in, w1f.T, precision=lax.Precision.HIGHEST) + b1[:, 0], 0.0)
    return jnp.matmul(hid, w2, precision=lax.Precision.HIGHEST) + b2[0, 0]


if __name__ == "__main__":
    # Small shapes consistent with the module: f_dim=16, atts_dim=16, h_dim=32.
    F_DIM, ATTS_DIM, H_DIM = 16, 16, 32

    key = jax.random.PRNGKey(0)
    kp, kd = jax.random.split(key)
    params = init_params(kp, F_DIM, ATTS_DIM, H_DIM)

    # B=8: single full-extent tile.  B=256: two exact 128-sample tiles (grid path).
    for i, B in enumerate((8, 256)):
        kx, katt = jax.random.split(jax.random.fold_in(kd, i))
        x = jax.random.normal(kx, (B, F_DIM), dtype=jnp.float32)
        att = jax.random.normal(katt, (B, ATTS_DIM), dtype=jnp.float32)

        out = discriminator_forward(x, att, params)
        jax.block_until_ready(out)

        ref = _reference(x, att, params)
        assert out.shape == (B, 1)
        assert jnp.allclose(out, ref, atol=1e-4, rtol=1e-4)

    print("KERNEL_OK")
</pallas_src>

<mosaic_0001>
module attributes {stable_mosaic.version = 11 : i64} {
  func.func @_disc_kernel(%arg0: i32, %arg1: memref<8x16xf32, #tpu.memory_space<vmem>>, %arg2: memref<8x16xf32, #tpu.memory_space<vmem>>, %arg3: memref<32x16xbf16, #tpu.memory_space<vmem>>, %arg4: memref<32x16xbf16, #tpu.memory_space<vmem>>, %arg5: memref<32x1xf32, #tpu.memory_space<vmem>>, %arg6: memref<32x1xf32, #tpu.memory_space<vmem>>, %arg7: memref<1x1xf32, #tpu.memory_space<vmem>>, %arg8: memref<1x8xf32, #tpu.memory_space<vmem>>) attributes {dimension_semantics = [#tpu.dimension_semantics<parallel>], iteration_bounds = array<i64: 1>, scalar_prefetch = 0 : i64, scratch_operands = 0 : i64, tpu.core_type = #tpu.core_type<tc>, window_params = [{transform_indices = @transform_0, window_bounds = array<i64: 8, 16>}, {transform_indices = @transform_1, window_bounds = array<i64: 8, 16>}, {pipeline_mode = #tpu.pipeline_mode<synchronous>, transform_indices = @transform_2, window_bounds = array<i64: 32, 16>}, {pipeline_mode = #tpu.pipeline_mode<synchronous>, transform_indices = @transform_3, window_bounds = array<i64: 32, 16>}, {pipeline_mode = #tpu.pipeline_mode<synchronous>, transform_indices = @transform_4, window_bounds = array<i64: 32, 1>}, {pipeline_mode = #tpu.pipeline_mode<synchronous>, transform_indices = @transform_5, window_bounds = array<i64: 32, 1>}, {pipeline_mode = #tpu.pipeline_mode<synchronous>, transform_indices = @transform_6, window_bounds = array<i64: 1, 1>}, {transform_indices = @transform_7, window_bounds = array<i64: 1, 8>}]} {
    %c0 = arith.constant 0 : index
    %c0_0 = arith.constant 0 : index
    %0 = vector.load %arg1[%c0, %c0_0] : memref<8x16xf32, #tpu.memory_space<vmem>>, vector<8x16xf32>
    %1 = arith.truncf %0 : vector<8x16xf32> to vector<8x16xbf16>
    %c0_1 = arith.constant 0 : index
    %c0_2 = arith.constant 0 : index
    %2 = vector.load %arg2[%c0_1, %c0_2] : memref<8x16xf32, #tpu.memory_space<vmem>>, vector<8x16xf32>
    %3 = arith.truncf %2 : vector<8x16xf32> to vector<8x16xbf16>
    %c0_3 = arith.constant 0 : index
    %c0_4 = arith.constant 0 : index
    %4 = vector.load %arg3[%c0_3, %c0_4] : memref<32x16xbf16, #tpu.memory_space<vmem>>, vector<32x16xbf16>
    %cst = arith.constant dense<0.000000e+00> : vector<32x8xf32>
    %5 = tpu.matmul %4, %1, %cst {dimension_numbers = #tpu.dot_dimension_numbers<[1], [1], [0], [0], [0, 0, 1, 0], [], []>} : vector<32x16xbf16>, vector<8x16xbf16>, vector<32x8xf32> -> vector<32x8xf32>
    %c0_5 = arith.constant 0 : index
    %c0_6 = arith.constant 0 : index
    %6 = vector.load %arg4[%c0_5, %c0_6] : memref<32x16xbf16, #tpu.memory_space<vmem>>, vector<32x16xbf16>
    %cst_7 = arith.constant dense<0.000000e+00> : vector<32x8xf32>
    %7 = tpu.matmul %6, %3, %cst_7 {dimension_numbers = #tpu.dot_dimension_numbers<[1], [1], [0], [0], [0, 0, 1, 0], [], []>} : vector<32x16xbf16>, vector<8x16xbf16>, vector<32x8xf32> -> vector<32x8xf32>
    %8 = arith.addf %5, %7 : vector<32x8xf32>
    %c0_8 = arith.constant 0 : index
    %c0_9 = arith.constant 0 : index
    %9 = vector.load %arg5[%c0_8, %c0_9] : memref<32x1xf32, #tpu.memory_space<vmem>>, vector<32x1xf32>
    %10 = vector.broadcast %9 : vector<32x1xf32> to vector<32x8xf32>
    %11 = arith.addf %8, %10 : vector<32x8xf32>
    %cst_10 = arith.constant 0.000000e+00 : f32
    %12 = vector.broadcast %cst_10 : f32 to vector<32x8xf32>
    %13 = arith.maximumf %11, %12 : vector<32x8xf32>
    %c0_11 = arith.constant 0 : index
    %c0_12 = arith.constant 0 : index
    %14 = vector.load %arg6[%c0_11, %c0_12] : memref<32x1xf32, #tpu.memory_space<vmem>>, vector<32x1xf32>
    %15 = vector.broadcast %14 : vector<32x1xf32> to vector<32x8xf32>
    %16 = arith.mulf %13, %15 : vector<32x8xf32>
    %cst_13 = arith.constant dense<0.000000e+00> : vector<8xf32>
    %17 = vector.multi_reduction <add>, %16, %cst_13 [0] : vector<32x8xf32> to vector<8xf32>
    %18 = vector.shape_cast %17 : vector<8xf32> to vector<1x8xf32>
    %c0_14 = arith.constant 0 : index
    %c0_15 = arith.constant 0 : index
    %19 = vector.load %arg7[%c0_14, %c0_15] : memref<1x1xf32, #tpu.memory_space<vmem>>, vector<1x1xf32>
    %20 = vector.broadcast %19 : vector<1x1xf32> to vector<1x8xf32>
    %21 = arith.addf %18, %20 : vector<1x8xf32>
    %c0_16 = arith.constant 0 : index
    %c0_17 = arith.constant 0 : index
    %22 = vector.load %arg8[%c0_16, %c0_17] : memref<1x8xf32, #tpu.memory_space<vmem>>, vector<1x8xf32>
    tpu.vector_store %arg8[%c0_16, %c0_17], %21 {strides = array<i32>} : memref<1x8xf32, #tpu.memory_space<vmem>>, vector<1x8xf32>,
    return
  }
  func.func @transform_0(%arg0: i32) -> (i32, i32) {
    %c0_i32 = arith.constant 0 : i32
    %c0_i32_0 = arith.constant 0 : i32
    return %arg0, %c0_i32 : i32, i32
  }
  func.func @transform_1(%arg0: i32) -> (i32, i32) {
    %c0_i32 = arith.constant 0 : i32
    %c0_i32_0 = arith.constant 0 : i32
    return %arg0, %c0_i32 : i32, i32
  }
  func.func @transform_2(%arg0: i32) -> (i32, i32) {
    %c0_i32 = arith.constant 0 : i32
    %c0_i32_0 = arith.constant 0 : i32
    %c0_i32_1 = arith.constant 0 : i32
    return %c0_i32, %c0_i32_0 : i32, i32
  }
  func.func @transform_3(%arg0: i32) -> (i32, i32) {
    %c0_i32 = arith.constant 0 : i32
    %c0_i32_0 = arith.constant 0 : i32
    %c0_i32_1 = arith.constant 0 : i32
    return %c0_i32, %c0_i32_0 : i32, i32
  }
  func.func @transform_4(%arg0: i32) -> (i32, i32) {
    %c0_i32 = arith.constant 0 : i32
    %c0_i32_0 = arith.constant 0 : i32
    %c0_i32_1 = arith.constant 0 : i32
    return %c0_i32, %c0_i32_0 : i32, i32
  }
  func.func @transform_5(%arg0: i32) -> (i32, i32) {
    %c0_i32 = arith.constant 0 : i32
    %c0_i32_0 = arith.constant 0 : i32
    %c0_i32_1 = arith.constant 0 : i32
    return %c0_i32, %c0_i32_0 : i32, i32
  }
  func.func @transform_6(%arg0: i32) -> (i32, i32) {
    %c0_i32 = arith.constant 0 : i32
    %c0_i32_0 = arith.constant 0 : i32
    %c0_i32_1 = arith.constant 0 : i32
    return %c0_i32, %c0_i32_0 : i32, i32
  }
  func.func @transform_7(%arg0: i32) -> (i32, i32) {
    %c0_i32 = arith.constant 0 : i32
    %c0_i32_0 = arith.constant 0 : i32
    return %c0_i32, %arg0 : i32, i32
  }
}

</mosaic_0001>

<bundles_post_ra>
// kernel: discriminator_forward.1
= control target key start
LH: loop header
LB: loop body
LE: loop exit
PB: predicated region body
PF: predicated region fallthrough
CT: control target
= control target key end

     0   :  { %s372_s0 = inlined_call_operand.vmem [shape: f32[8,16], index: 0, kind: input, shape index: {}]   ;;  %s373_s1 = inlined_call_operand.vmem [shape: f32[8,16], index: 1, kind: input, shape index: {}]   ;;  %s374_s2 = inlined_call_operand.vmem [shape: bf16[32,16], index: 2, kind: input, shape index: {}]   ;;  %s375_s3 = inlined_call_operand.vmem [shape: bf16[32,16], index: 3, kind: input, shape index: {}]   ;;  %s376_s4 = inlined_call_operand.vmem [shape: f32[32,1], index: 4, kind: input, shape index: {}]   ;;  %s377_s5 = inlined_call_operand.vmem [shape: f32[32,1], index: 5, kind: input, shape index: {}]   ;;  %s378_s6 = inlined_call_operand.<no memory space> [shape: f32[1,1], index: 6, kind: input, shape index: {}]   ;;  %s379_s7 = inlined_call_operand.hbm [shape: f32[1,8], index: 7, kind: output, shape index: {}]  }
   0x1   :  { %v12_v0 = vstv %s378_s6 }
   0x2   :  { %13 = vst [vmem:[#allocation2] sm:$0x1] %v12_v0 }
   0x3   :  { %v32_v1 = vld [vmem:[%s373_s1] sm:$0xff]  ;;  %vm52_vm0 = vcmask 130048   ;;  %v276_v6 = vmov 0   ;;  %v121_v7 = vld [vmem:[%s376_s4 + $0x10] sm:$0xff] }
   0x4   :  { %v30_v2 = vld [vmem:[%s372_s0] sm:$0xff]  ;;  %v33_v4 = vpack.c.bf16 %v32_v1, %v32_v1  ;;  %247 = vset.pattern.permute.xlu0 %v276_v6  ;;  %248 = vset.pattern.permute.xlu1 %v276_v6 }
   0x5   :  { %v119_v3 = vld [vmem:[%s376_s4] sm:$0xff]  ;;  %v31_v5 = vpack.c.bf16 %v30_v2, %v30_v2  ;;  %135 = vperm.xlu1 %248, %v121_v7   ;;  %249 = vset.pattern.permute.xlu2 %v276_v6 }
   0x6   :  { %125 = vperm.xlu0 %247, %v119_v3   ;;  %v60_v8 = vsel %vm52_vm0, %v33_v4, 0  ;;  %v151_v10 = vld [vmem:[%s377_s5] sm:$0xff] }
   0x7   :  { %v98_v9 = vsel %vm52_vm0, %v31_v5, 0  ;;  %69 = vmatpush.bf16.xpose.msra.mxu0 %v60_v8  ;;  %243 = vmatpush.bf16.xpose.msra.mxu2 %v60_v8 }
   0x8   :  { %107 = vmatpush.bf16.xpose.msra.mxu1 %v98_v9  ;;  %244 = vmatpush.bf16.xpose.msra.mxu3 %v98_v9 }
   0x9   :  { %14 = vsyncpa [#allocation4], 0  ;;  %v241_v11 = vld [vmem:[%s375_s3] sm:$0xff]  ;;  %157 = vperm.xlu2 %249, %v151_v10   ;;  %v242_v12 = vld [vmem:[%s375_s3 + $0x8] sm:$0xff]  ;;  %vm179_vm1 = vcmask 64512   ;;  %s210_s28 = sshll.u32 %s379_s7, 4  ;;  %s211_s28 = int_to_ptr.hbm [resolvable:$true] %s210_s28 }
   0xa   :  { %v120_v13 = vld [vmem:[%s376_s4 + $0x8] sm:$0xff]  ;;  %v122_v14 = vld [vmem:[%s376_s4 + $0x18] sm:$0xff]  ;;  %v239_v15 = vld [vmem:[%s374_s2] sm:$0xff]  ;;  %vm201_vm2 = vcmask 57344  }
   0xb   :  { %v240_v16 = vld [vmem:[%s374_s2 + $0x8] sm:$0xff]  ;;  %v153_v18 = vld [vmem:[%s377_s5 + $0x10] sm:$0xff]  ;;  %v154_v19 = vld [vmem:[%s377_s5 + $0x18] sm:$0xff] }
   0xc   :  { %v152_v17 = vld [vmem:[%s377_s5 + $0x8] sm:$0xff]  ;;  %v193_v20 = vld [vmem:[#allocation2] sm:$0x1]  ;;  %s277_s5 = smov [#allocation3]  }
   0xd   :  { %140 = vperm.xlu1 %248, %v122_v14   ;;  %s208_s25 = sshll.u32 %s277_s5, 4  ;;  %s209_s25 = int_to_ptr.vmem [resolvable:$true] %s208_s25 }
   0xe   :  { %130 = vperm.xlu0 %247, %v120_v13   ;;  %227 = vmatmul.msk.bf16.vlgmr.msra.gmra.mxu0 %vm52_vm0, %v241_v11 }
   0xf   :  { %228 = vmatmul.msk.bf16.vlgmr.msra.gmra.mxu2 %vm52_vm0, %v242_v12  ;;  %237 = vmatmul.msk.bf16.vlgmr.msra.gmra.mxu1 %vm52_vm0, %v239_v15 }
  0x10   :  { %238 = vmatmul.msk.bf16.vlgmr.msra.gmra.mxu3 %vm52_vm0, %v240_v16 }
  0x11   :  { %162 = vperm.xlu2 %249, %v152_v17  }
  0x15   :  { %172 = vperm.xlu1 %248, %v154_v19  }
  0x16   :  { %167 = vperm.xlu0 %247, %v153_v18  }
  0x19   :  { %196 = vperm.xlu2 %249, %v193_v20  }
  0x63   :  { %v158_v26 = vpop.permute.xlu2 %157 }
  0x6b   :  { %v163_v43 = vpop.permute.xlu2 %162 }
  0x73   :  { %v197_v0 = vpop.permute.xlu2 %196 }
  0x74   :  { %v199_v2 = vperm.slane %v197_v0, 0 }
  0x77   :  { %v136_v23 = vpop.permute.xlu1 %135 }
  0x78   :  { %v126_v21 = vpop.permute.xlu0 %125 }
  0x7f   :  { %v141_v37 = vpop.permute.xlu1 %140 }
  0x80   :  { %v131_v29 = vpop.permute.xlu0 %130 }
  0x87   :  { %v173_v54 = vpop.permute.xlu1 %172 }
  0x88   :  { %v168_v47 = vpop.permute.xlu0 %167 }
  0x8b   :  { %v71_v22 = vpop.f32.mrf.mxu0 }
  0x8c   :  { %v109_v24 = vpop.f32.mrf.mxu1 }
  0x8d   :  { %v110_v25 = vadd.f32 %v109_v24, %v71_v22 }
  0x8f   :  { %v143_v27 = vadd.f32 %v126_v21, %v110_v25 }
  0x91   :  { %v147_v34 = vmax.f32 %v143_v27, 0.0 }
  0x92   :  { %v76_v28 = vpop.f32.mrf.mxu2 }
  0x93   :  { %v114_v30 = vpop.f32.mrf.mxu3  ;;  %v73_v32 = vpop.f32.mrf.mxu0  ;;  %v175_v39 = vmul.f32 %v158_v26, %v147_v34 }
  0x94   :  { %v115_v31 = vadd.f32 %v114_v30, %v76_v28  ;;  %v111_v33 = vpop.f32.mrf.mxu1 }
  0x95   :  { %v112_v36 = vadd.f32 %v111_v33, %v73_v32  ;;  %v180_v48 = vsel %vm179_vm1, %v175_v39, 0.0 }
  0x96   :  { %v145_v35 = vadd.f32 %v136_v23, %v115_v31 }
  0x97   :  { %v144_v38 = vadd.f32 %v131_v29, %v112_v36 }
  0x98   :  { %v149_v40 = vmax.f32 %v145_v35, 0.0 }
  0x99   :  { %v148_v41 = vmax.f32 %v144_v38, 0.0 }
  0x9a   :  { %v78_v42 = vpop.f32.mrf.mxu2  ;;  %v177_v49 = vmul.f32 %v168_v47, %v149_v40 }
  0x9b   :  { %v116_v44 = vpop.f32.mrf.mxu3  ;;  %v176_v45 = vmul.f32 %v163_v43, %v148_v41 }
  0x9c   :  { %v117_v46 = vadd.f32 %v116_v44, %v78_v42  ;;  %v183_v55 = vsel %vm179_vm1, %v177_v49, 0.0 }
  0x9d   :  { %v181_v50 = vsel %vm179_vm1, %v176_v45, 0.0 }
  0x9e   :  { %v146_v51 = vadd.f32 %v141_v37, %v117_v46  ;;  %v182_v52 = vadd.f32 %v181_v50, %v180_v48 }
  0xa0   :  { %v150_v53 = vmax.f32 %v146_v51, 0.0  ;;  %v184_v57 = vadd.f32 %v183_v55, %v182_v52 }
  0xa2   :  { %v178_v56 = vmul.f32 %v173_v54, %v150_v53 }
  0xa4   :  { %v185_v58 = vsel %vm179_vm1, %v178_v56, 0.0 }
  0xa5   :  { %v186_v59 = vadd.f32 %v185_v58, %v184_v57 }
  0xa7   :  { %v187_v60 = vrot.slane %v186_v59, 4 }
  0xa9   :  { %v188_v61 = vadd.f32 %v187_v60, %v186_v59 }
  0xab   :  { %v189_v62 = vrot.slane %v188_v61, 2 }
  0xad   :  { %v190_v63 = vadd.f32 %v189_v62, %v188_v61 }
  0xaf   :  { %v191_v1 = vrot.slane %v190_v63, 1 }
  0xb1   :  { %v192_v3 = vadd.f32 %v191_v1, %v190_v63 }
  0xb3   :  { %v200_v4 = vadd.f32 %v199_v2, %v192_v3 }
  0xb5   :  { %202 = vst.msk [vmem:[#allocation3] sm:$0x1] %vm201_vm2, %v200_v4 }
  0xb6   :  { %213 = dma.vmem_to_hbm [thread:$0]  %s209_s25, 16, %s211_s28, [#allocation4]  }
  0xb7   :  { %274 = dma.done.wait [#allocation4], 16  }
  0xb8   :  { %275 = vsyncadd [#allocation4], 4294967280 }
  0xb9   :  { %218 = vsyncpa [#allocation4], 1 }

</bundles_post_ra>
